<compile_context>
chip_gen: v6e
topology: v6e:2x2x1
jax: 0.10.0
libtpu: 0.0.40
codegen_flags: <defaults>
</compile_context>

<pallas_src>
import jax
import jax.numpy as jnp
from jax import lax
from jax.experimental import pallas as pl
from jax.experimental.pallas import tpu as pltpu

BLOCK_SIZE = 128   # max sequence length (tril buffer size in the torch module)
N_EMBD = 256       # C
NEG_INF = -1e30    # large finite negative (avoids 0/0 NaN; diagonal is never masked)


def _head_kernel(x_ref, wqkv_ref, bqkv_ref, o_ref):
    # x_ref:    (Bb*T, C)   activations for Bb batch rows, flattened in the wrapper
    # wqkv_ref: (C, 3H)     fused Q/K/V projection weights, already bf16
    # bqkv_ref: (1, 3H)     fused Q/K/V biases, f32
    # o_ref:    (Bb, T, H)  output block
    Bb, T, H = o_ref.shape
    C = x_ref.shape[1]

    # Fused QKV projection: one MXU pass with M = Bb*T, N = 3H. bf16 in, f32 acc.
    x2d = x_ref[...].astype(jnp.bfloat16)
    qkv = jnp.dot(x2d, wqkv_ref[...], preferred_element_type=jnp.float32)
    qkv = qkv + bqkv_ref[...]
    qkv = qkv.reshape(Bb, T, 3 * H)

    # Scale q (T*H elems) instead of att (T*T elems). Scale is C**-0.5 (n_embd),
    # exactly as the PyTorch module.
    scale = float(C) ** -0.5
    q = (qkv[..., :H] * scale).astype(jnp.bfloat16)
    k = qkv[..., H:2 * H].astype(jnp.bfloat16)
    v = qkv[..., 2 * H:].astype(jnp.bfloat16)

    # Scores: contract the last axis of both operands (no explicit transpose of k).
    att = jnp.einsum("bth,bsh->bts", q, k, preferred_element_type=jnp.float32)

    # Causal mask built once as a (T, T) compare, broadcast over the batch dim.
    row = lax.broadcasted_iota(jnp.int32, (T, T), 0)
    col = lax.broadcasted_iota(jnp.int32, (T, T), 1)
    mask = (col > row)[None, :, :]                       # (1, T, T) bool
    att = jnp.where(mask, NEG_INF, att)

    # Numerically-stable softmax in f32; defer the normalization to the output.
    m = jnp.max(att, axis=-1, keepdims=True)
    p = jnp.exp(att - m)
    denom = jnp.sum(p, axis=-1, keepdims=True)           # (Bb, T, 1)

    # Weighted sum of (unnormalized) probabilities with values, f32 accumulation,
    # then normalize the small (Bb, T, H) result (reciprocal goes to the EUP slot).
    out = jnp.einsum("bts,bsh->bth", p.astype(jnp.bfloat16), v,
                     preferred_element_type=jnp.float32)
    out = out * pl.reciprocal(denom, approx=True)

    o_ref[...] = out.astype(o_ref.dtype)


def _num_tensorcores() -> int:
    """Best-effort TensorCore count: v5e/v6e have 1 TC per chip, v7x has 2."""
    try:
        kind = (jax.devices()[0].device_kind or "").lower()
    except Exception:
        return 1
    return 2 if "v7" in kind else 1


def _pick_batch_block(B: int, n_tc: int) -> int:
    """Single grid step on 1-TC gens; exactly two parallel steps on 2-TC gens."""
    if n_tc >= 2 and B % 2 == 0 and B >= 2:
        return B // 2
    return B


def head_forward(x, wq, bq, wk, bk, wv, bv, *, batch_block=None):
    """x: (B, T, C) f32; wq/wk/wv: (C, H); bq/bk/bv: (1, H). Returns (B, T, H)."""
    B, T, C = x.shape
    H = wq.shape[1]
    assert C == N_EMBD
    assert T <= BLOCK_SIZE

    Bb = batch_block if batch_block is not None else _pick_batch_block(B, _num_tensorcores())
    assert B % Bb == 0
    n_steps = B // Bb

    # Fuse the three projections into a single (C, 3H) matmul; cast to bf16 once
    # here (grid-invariant) so the kernel never re-casts the weights per step.
    wqkv = jnp.concatenate([wq, wk, wv], axis=1).astype(jnp.bfloat16)
    bqkv = jnp.concatenate([bq, bk, bv], axis=1)          # stays f32

    # Flatten x to 2-D in the wrapper (free metadata reshape on the HBM array);
    # the kernel receives a plain (Bb*T, C) block.
    x2d = x.reshape(B * T, C)

    out = pl.pallas_call(
        _head_kernel,
        out_shape=jax.ShapeDtypeStruct((B, T, H), x.dtype),
        grid_spec=pltpu.PrefetchScalarGridSpec(
            num_scalar_prefetch=0,
            grid=(n_steps,),
            in_specs=[
                pl.BlockSpec((Bb * T, C), lambda i: (i, 0)),
                pl.BlockSpec((C, 3 * H), lambda i: (0, 0)),
                pl.BlockSpec((1, 3 * H), lambda i: (0, 0)),
            ],
            out_specs=pl.BlockSpec((Bb, T, H), lambda i: (i, 0, 0)),
        ),
        compiler_params=pltpu.CompilerParams(
            dimension_semantics=("parallel",)),
    )(x2d, wqkv, bqkv)
    return out


def reference_forward(x, wq, bq, wk, bk, wv, bv):
    """Pure-JAX f32 reference matching the PyTorch module semantics."""
    B, T, C = x.shape
    q = x @ wq + bq
    k = x @ wk + bk
    v = x @ wv + bv
    att = jnp.einsum("btd,bsd->bts", q, k) * (C ** -0.5)
    mask = jnp.tril(jnp.ones((T, T), dtype=bool))
    att = jnp.where(mask, att, -jnp.inf)
    att = jax.nn.softmax(att, axis=-1)
    return jnp.einsum("bts,bsd->btd", att, v)


if __name__ == "__main__":
    B, T, C = 8, 8, N_EMBD
    HEAD_SIZE = 32

    key = jax.random.PRNGKey(0)
    kx, kq, kbq, kk, kbk, kv, kbv = jax.random.split(key, 7)

    # Deterministic parameter init (uniform, roughly matching nn.Linear scale).
    bound = 1.0 / (C ** 0.5)
    x = jax.random.normal(kx, (B, T, C), dtype=jnp.float32)
    wq = jax.random.uniform(kq, (C, HEAD_SIZE), jnp.float32, -bound, bound)
    bq = jax.random.uniform(kbq, (1, HEAD_SIZE), jnp.float32, -bound, bound)
    wk = jax.random.uniform(kk, (C, HEAD_SIZE), jnp.float32, -bound, bound)
    bk = jax.random.uniform(kbk, (1, HEAD_SIZE), jnp.float32, -bound, bound)
    wv = jax.random.uniform(kv, (C, HEAD_SIZE), jnp.float32, -bound, bound)
    bv = jax.random.uniform(kbv, (1, HEAD_SIZE), jnp.float32, -bound, bound)

    out = head_forward(x, wq, bq, wk, bk, wv, bv)
    out = jax.block_until_ready(out)

    ref = reference_forward(x, wq, bq, wk, bk, wv, bv)
    assert out.shape == (B, T, HEAD_SIZE)
    # Tolerance loosened vs. the f32 reference because matmul inputs are bf16
    # (f32 accumulation) and the softmax reciprocal uses the approx EUP path.
    assert jnp.allclose(out, ref, atol=2e-2, rtol=2e-2)

    print("KERNEL_OK")
</pallas_src>

<mosaic_0001>
module attributes {stable_mosaic.version = 11 : i64} {
  func.func @_head_kernel(%arg0: i32, %arg1: memref<64x256xf32, #tpu.memory_space<vmem>>, %arg2: memref<256x96xbf16, #tpu.memory_space<vmem>>, %arg3: memref<1x96xf32, #tpu.memory_space<vmem>>, %arg4: memref<8x8x32xf32, #tpu.memory_space<vmem>>) attributes {dimension_semantics = [#tpu.dimension_semantics<parallel>], iteration_bounds = array<i64: 1>, scalar_prefetch = 0 : i64, scratch_operands = 0 : i64, tpu.core_type = #tpu.core_type<tc>, window_params = [{transform_indices = @transform_0, window_bounds = array<i64: 64, 256>}, {pipeline_mode = #tpu.pipeline_mode<synchronous>, transform_indices = @transform_1, window_bounds = array<i64: 256, 96>}, {pipeline_mode = #tpu.pipeline_mode<synchronous>, transform_indices = @transform_2, window_bounds = array<i64: 1, 96>}, {transform_indices = @transform_3, window_bounds = array<i64: 8, 8, 32>}]} {
    %c0 = arith.constant 0 : index
    %c0_0 = arith.constant 0 : index
    %0 = vector.load %arg1[%c0, %c0_0] : memref<64x256xf32, #tpu.memory_space<vmem>>, vector<64x256xf32>
    %1 = arith.truncf %0 : vector<64x256xf32> to vector<64x256xbf16>
    %c0_1 = arith.constant 0 : index
    %c0_2 = arith.constant 0 : index
    %2 = vector.load %arg2[%c0_1, %c0_2] : memref<256x96xbf16, #tpu.memory_space<vmem>>, vector<256x96xbf16>
    %cst = arith.constant dense<0.000000e+00> : vector<64x96xf32>
    %3 = tpu.matmul %1, %2, %cst {dimension_numbers = #tpu.dot_dimension_numbers<[1], [0], [0], [1], [0, 0, 1, 1], [], []>} : vector<64x256xbf16>, vector<256x96xbf16>, vector<64x96xf32> -> vector<64x96xf32>
    %c0_3 = arith.constant 0 : index
    %c0_4 = arith.constant 0 : index
    %4 = vector.load %arg3[%c0_3, %c0_4] : memref<1x96xf32, #tpu.memory_space<vmem>>, vector<1x96xf32>
    %5 = vector.broadcast %4 : vector<1x96xf32> to vector<64x96xf32>
    %6 = arith.addf %3, %5 : vector<64x96xf32>
    %7 = vector.shape_cast %6 : vector<64x96xf32> to vector<8x8x96xf32>
    %8 = vector.extract_strided_slice %7 {offsets = [0, 0, 0], sizes = [8, 8, 32], strides = [1, 1, 1]} : vector<8x8x96xf32> to vector<8x8x32xf32>
    %cst_5 = arith.constant 6.250000e-02 : f32
    %9 = vector.broadcast %cst_5 : f32 to vector<8x8x32xf32>
    %10 = arith.mulf %8, %9 : vector<8x8x32xf32>
    %11 = arith.truncf %10 : vector<8x8x32xf32> to vector<8x8x32xbf16>
    %12 = vector.extract_strided_slice %7 {offsets = [0, 0, 32], sizes = [8, 8, 32], strides = [1, 1, 1]} : vector<8x8x96xf32> to vector<8x8x32xf32>
    %13 = arith.truncf %12 : vector<8x8x32xf32> to vector<8x8x32xbf16>
    %14 = vector.extract_strided_slice %7 {offsets = [0, 0, 64], sizes = [8, 8, 32], strides = [1, 1, 1]} : vector<8x8x96xf32> to vector<8x8x32xf32>
    %15 = arith.truncf %14 : vector<8x8x32xf32> to vector<8x8x32xbf16>
    "tpu.trace_start"() <{level = 10 : i32, message = "bth,bsh->bts"}> : () -> ()
    %cst_6 = arith.constant dense<0.000000e+00> : vector<8x8x8xf32>
    %16 = tpu.matmul %11, %13, %cst_6 {dimension_numbers = #tpu.dot_dimension_numbers<[2], [2], [1], [1], [0, 0, 0, 1, 1, 1], [0], [0]>} : vector<8x8x32xbf16>, vector<8x8x32xbf16>, vector<8x8x8xf32> -> vector<8x8x8xf32>
    "tpu.trace_stop"() : () -> ()
    %17 = tpu.iota {dimensions = array<i32: 0>} : vector<8x8xi32>
    %18 = tpu.iota {dimensions = array<i32: 1>} : vector<8x8xi32>
    %19 = arith.cmpi sgt, %18, %17 : vector<8x8xi32>
    %20 = vector.shape_cast %19 : vector<8x8xi1> to vector<1x8x8xi1>
    %cst_7 = arith.constant -1.000000e+30 : f32
    %21 = vector.shape_cast %20 : vector<1x8x8xi1> to vector<1x8x8xi1>
    %22 = vector.broadcast %21 : vector<1x8x8xi1> to vector<8x8x8xi1>
    %23 = vector.broadcast %cst_7 : f32 to vector<8x8x8xf32>
    %24 = arith.select %22, %23, %16 : vector<8x8x8xi1>, vector<8x8x8xf32>
    %cst_8 = arith.constant dense<0xFF800000> : vector<8x8xf32>
    %25 = vector.multi_reduction <maximumf>, %24, %cst_8 [2] : vector<8x8x8xf32> to vector<8x8xf32>
    %26 = vector.shape_cast %25 : vector<8x8xf32> to vector<8x8x1xf32>
    %27 = vector.broadcast %26 : vector<8x8x1xf32> to vector<8x8x8xf32>
    %28 = arith.subf %24, %27 : vector<8x8x8xf32>
    %29 = math.exp %28 : vector<8x8x8xf32>
    %cst_9 = arith.constant dense<0.000000e+00> : vector<8x8xf32>
    %30 = vector.multi_reduction <add>, %29, %cst_9 [2] : vector<8x8x8xf32> to vector<8x8xf32>
    %31 = vector.shape_cast %30 : vector<8x8xf32> to vector<8x8x1xf32>
    %32 = arith.truncf %29 : vector<8x8x8xf32> to vector<8x8x8xbf16>
    "tpu.trace_start"() <{level = 10 : i32, message = "bts,bsh->bth"}> : () -> ()
    %cst_10 = arith.constant dense<0.000000e+00> : vector<8x8x32xf32>
    %33 = tpu.matmul %32, %15, %cst_10 {dimension_numbers = #tpu.dot_dimension_numbers<[2], [1], [1], [2], [0, 0, 0, 1, 1, 2], [0], [0]>} : vector<8x8x8xbf16>, vector<8x8x32xbf16>, vector<8x8x32xf32> -> vector<8x8x32xf32>
    "tpu.trace_stop"() : () -> ()
    %34 = tpu.reciprocal %31 {approx = true} : vector<8x8x1xf32> -> vector<8x8x1xf32>
    %35 = vector.broadcast %34 : vector<8x8x1xf32> to vector<8x8x32xf32>
    %36 = arith.mulf %33, %35 : vector<8x8x32xf32>
    %c0_11 = arith.constant 0 : index
    %c0_12 = arith.constant 0 : index
    %c0_13 = arith.constant 0 : index
    %37 = vector.load %arg4[%c0_11, %c0_12, %c0_13] : memref<8x8x32xf32, #tpu.memory_space<vmem>>, vector<8x8x32xf32>
    tpu.vector_store %arg4[%c0_11, %c0_12, %c0_13], %36 {strides = array<i32>} : memref<8x8x32xf32, #tpu.memory_space<vmem>>, vector<8x8x32xf32>,
    return
  }
  func.func @transform_0(%arg0: i32) -> (i32, i32) {
    %c0_i32 = arith.constant 0 : i32
    %c0_i32_0 = arith.constant 0 : i32
    return %arg0, %c0_i32 : i32, i32
  }
  func.func @transform_1(%arg0: i32) -> (i32, i32) {
    %c0_i32 = arith.constant 0 : i32
    %c0_i32_0 = arith.constant 0 : i32
    %c0_i32_1 = arith.constant 0 : i32
    return %c0_i32, %c0_i32_0 : i32, i32
  }
  func.func @transform_2(%arg0: i32) -> (i32, i32) {
    %c0_i32 = arith.constant 0 : i32
    %c0_i32_0 = arith.constant 0 : i32
    %c0_i32_1 = arith.constant 0 : i32
    return %c0_i32, %c0_i32_0 : i32, i32
  }
  func.func @transform_3(%arg0: i32) -> (i32, i32, i32) {
    %c0_i32 = arith.constant 0 : i32
    %c0_i32_0 = arith.constant 0 : i32
    %c0_i32_1 = arith.constant 0 : i32
    return %arg0, %c0_i32, %c0_i32_0 : i32, i32, i32
  }
}

</mosaic_0001>

<bundles_post_ra>
// kernel: tpu_custom_call.1
= control target key start
LH: loop header
LB: loop body
LE: loop exit
PB: predicated region body
PF: predicated region fallthrough
CT: control target
= control target key end

     0   :  { %s1776_s0 = inlined_call_operand.vmem [shape: f32[64,256], index: 0, kind: input, shape index: {}]   ;;  %s1777_s1 = inlined_call_operand.vmem [shape: bf16[256,96], index: 1, kind: input, shape index: {}]   ;;  %s1778_s2 = inlined_call_operand.vmem [shape: f32[1,96], index: 2, kind: input, shape index: {}]   ;;  %s1779_s3 = inlined_call_operand.hbm [shape: f32[8,8,32], index: 3, kind: output, shape index: {}]  }
   0x1   :  { %v1386_v0 = vld [vmem:[%s1777_s1 + $0x78] sm:$0xff]   ;;  %v1388_v2 = vld [vmem:[%s1777_s1 + $0x70] sm:$0xff]   ;;  %v1390_v4 = vld [vmem:[%s1777_s1 + $0x68] sm:$0xff]  }
   0x2   :  { %v1387_v1 = vld [vmem:[%s1777_s1 + $0x38] sm:$0xff]   ;;  %1211 = vmatprep.subr.bf16.mxu0 %v1386_v0  ;;  %v1389_v3 = vld [vmem:[%s1777_s1 + $0x30] sm:$0xff]   ;;  %v1391_v5 = vld [vmem:[%s1777_s1 + $0x28] sm:$0xff]  }
   0x3   :  { %1212 = vmatpush3.bf16.msra.mxu0 %v1387_v1  ;;  %v1392_v6 = vld [vmem:[%s1777_s1 + $0x60] sm:$0xff]   ;;  %v1394_v8 = vld [vmem:[%s1777_s1 + $0x58] sm:$0xff]   ;;  %v1396_v10 = vld [vmem:[%s1777_s1 + $0x50] sm:$0xff]  }
   0x4   :  { %1213 = vmatprep.subr.bf16.mxu0 %v1388_v2  ;;  %v1393_v7 = vld [vmem:[%s1777_s1 + $0x20] sm:$0xff]   ;;  %v1395_v9 = vld [vmem:[%s1777_s1 + $0x18] sm:$0xff]   ;;  %v17_v11 = vld [vmem:[%s1776_s0 + $0x8] sm:$0xff] }
   0x5   :  { %v19_v12 = vld [vmem:[%s1776_s0 + $0x18] sm:$0xff]  ;;  %v1397_v14 = vld [vmem:[%s1777_s1 + $0x10] sm:$0xff]   ;;  %v1398_v15 = vld [vmem:[%s1777_s1 + $0x48] sm:$0xff]  }
   0x6   :  { %v33_v13 = vpack.c.bf16 %v19_v12, %v17_v11 }
   0x7   :  { %1214 = vmatpush3.bf16.msra.mxu0 %v1389_v3 }
   0x8   :  { %1215 = vmatprep.subr.bf16.mxu0 %v1390_v4  ;;  %207 = vmatprep.mubr.bf16.mxu0 %v33_v13 }
   0xb   :  { %1216 = vmatpush3.bf16.msra.mxu0 %v1391_v5 }
   0xc   :  { %1217 = vmatprep.subr.bf16.mxu0 %v1392_v6 }
   0xf   :  { %1218 = vmatpush3.bf16.msra.mxu0 %v1393_v7 }
  0x10   :  { %1219 = vmatprep.subr.bf16.mxu0 %v1394_v8 }
  0x13   :  { %1220 = vmatpush3.bf16.msra.mxu0 %v1395_v9 }
  0x14   :  { %1221 = vmatprep.subr.bf16.mxu0 %v1396_v10 }
  0x15   :  { %8 = vsyncpa [#allocation3], 0  ;;  %v1399_v16 = vld [vmem:[%s1777_s1 + $0x8] sm:$0xff]   ;;  %v1400_v17 = vld [vmem:[%s1777_s1 + $0x40] sm:$0xff]   ;;  %v1456_v40 = vmov 0.0   ;;  %vm1457_vm0 = vmmov 0  }
  0x16   :  { %v1401_v18 = vld [vmem:[%s1777_s1] sm:$0xff]   ;;  %v18_v20 = vld [vmem:[%s1776_s0 + $0x10] sm:$0xff]  ;;  %v21_v21 = vld [vmem:[%s1776_s0 + $0x28] sm:$0xff]  ;;  %1283 = vmatprep.subr.bf16.mxu1 %v1456_v40  ;;  %1285 = vmatprep.mubr.msk.bf16.mxu1 %vm1457_vm0, %v1456_v40  ;;  %vm267_vm1 = vcmask 261120   ;;  %vm758_vm2 = vcmask 1043456   ;;  %vm672_vm4 = vcmask 64512  }
  0x17   :  { %1222 = vmatpush3.bf16.msra.mxu0 %v1397_v14  ;;  %v16_v19 = vld [vmem:[%s1776_s0] sm:$0xff]  ;;  %v23_v22 = vld [vmem:[%s1776_s0 + $0x38] sm:$0xff]  ;;  %v22_v26 = vld [vmem:[%s1776_s0 + $0x30] sm:$0xff]  ;;  %s1460_s23 = smov [#allocation2]  }
  0x18   :  { %1223 = vmatprep.subr.bf16.mxu0 %v1398_v15  ;;  %v32_v23 = vpack.c.bf16 %v18_v20, %v16_v19  ;;  %v35_v24 = vpack.c.bf16 %v23_v22, %v21_v21  ;;  %v20_v25 = vld [vmem:[%s1776_s0 + $0x20] sm:$0xff]  ;;  %v25_v27 = vld [vmem:[%s1776_s0 + $0x48] sm:$0xff]  ;;  %v27_v28 = vld [vmem:[%s1776_s0 + $0x58] sm:$0xff]  ;;  %s1167_s24 = sshll.u32 %s1460_s23, 4  ;;  %s1168_s24 = int_to_ptr.vmem [resolvable:$true] %s1167_s24 }
  0x19   :  { %v34_v29 = vpack.c.bf16 %v22_v26, %v20_v25  ;;  %v37_v30 = vpack.c.bf16 %v27_v28, %v25_v27  ;;  %v24_v31 = vld [vmem:[%s1776_s0 + $0x40] sm:$0xff]  ;;  %v26_v32 = vld [vmem:[%s1776_s0 + $0x50] sm:$0xff]  ;;  %v29_v33 = vld [vmem:[%s1776_s0 + $0x68] sm:$0xff]  ;;  %s1434_s25 = scalar_lea.vmem %s1168_s24, 1024  ;;  %p1439_p1 = scmp.lt.s32.totalorder %s1168_s24, %s1168_s24 }
  0x1a   :  { %v31_v34 = vld [vmem:[%s1776_s0 + $0x78] sm:$0xff]  ;;  %v36_v35 = vpack.c.bf16 %v26_v32, %v24_v31  ;;  %v28_v37 = vld [vmem:[%s1776_s0 + $0x60] sm:$0xff]  ;;  %v30_v38 = vld [vmem:[%s1776_s0 + $0x70] sm:$0xff]  ;;  %s1458_s0 = smov 96   ;;  %p1435_p0 = scmp.ne.s32.totalorder %s1168_s24, %s1434_s25 }
  0x1b   :  { %1224 = vmatpush3.bf16.msra.mxu0 %v1399_v16  ;;  %v39_v36 = vpack.c.bf16 %v31_v34, %v29_v33  ;;  %v38_v39 = vpack.c.bf16 %v30_v38, %v28_v37  ;;  %v1178_v42 = vld [vmem:[%s1778_s2] ss:$0 sm:$0xff]  ;;  %s1459_s2 = smov 64   ;;  %p1440_p2 = scmp.lt.s32.totalorder %s1434_s25, %s1434_s25 }
  0x1c   :  { %1225 = vmatprep.subr.bf16.mxu0 %v1400_v17 }
  0x1d   :  { %p1441_p3 = por %p1440_p2, %p1439_p1 }
  0x1f   :  { %1226 = vmatpush3.bf16.msra.mxu0 %v1401_v18  ;;  %p1442_p4 = pnand %p1441_p3, %p1435_p0 }
  0x20   :  { %1325 = vmatprep.subr.bf16.mxu0 %v1456_v40 }
  0x22   :  { %208 = vmatmul.mubr.bf16.vlgmr.msra.gmra.mxu0 %v32_v23 }
  0x23   :  { %215 = vmatprep.mubr.bf16.mxu0 %v35_v24 }
  0x2a   :  { %216 = vmatmul.mubr.bf16.gmra.mxu0 %v34_v29 }
  0x2b   :  { %223 = vmatprep.mubr.bf16.mxu0 %v37_v30 }
  0x32   :  { %224 = vmatmul.mubr.bf16.gmra.mxu0 %v36_v35 }
  0x33   :  { %231 = vmatprep.mubr.bf16.mxu0 %v39_v36 }
  0x3a   :  { %232 = vmatmul.mubr.bf16.gmra.mxu0 %v38_v39 }
  0x3b   :  { %1327 = vmatprep.mubr.msk.bf16.mxu0 %vm1457_vm0, %v1456_v40 }
  0xe2   :  { %v1227_v41 = vpop.f32.mrf.mxu0 }
  0xe4   :  { %v1228_v43 = vpop.f32.mrf.mxu0 }
  0xe5   :  { %v1229_v44 = vadd.f32 %v1228_v43, %v1227_v41 }
  0xe6   :  { %v1230_v45 = vpop.f32.mrf.mxu0 }
  0xe7   :  { %v210_v46 = vadd.f32 %v1229_v44, %v1178_v42 }
  0xe8   :  { %v1231_v47 = vpop.f32.mrf.mxu0 }
  0xe9   :  { %v1232_v48 = vadd.f32 %v1231_v47, %v1230_v45  ;;  %v256_v49 = vpack.c.bf16 %v210_v46, %v210_v46  ;;  %v240_v20 = vmul.f32 0.0625, %v210_v46 }
  0xea   :  { %v1233_v50 = vpop.f32.mrf.mxu0 }
  0xeb   :  { %v213_v51 = vadd.f32 %v1232_v48, %v1178_v42  ;;  %265 = vrot.lane.b32.xlu0 %v256_v49, %s1458_s0  ;;  %v248_v22 = vpack.c.bf16 %v240_v20, %v240_v20 }
  0xec   :  { %v1234_v52 = vpop.f32.mrf.mxu0 }
  0xed   :  { %v1235_v53 = vadd.f32 %v1234_v52, %v1233_v50  ;;  %v257_v54 = vpack.c.bf16 %v213_v51, %v213_v51  ;;  %v241_v24 = vmul.f32 0.0625, %v213_v51 }
  0xee   :  { %v1236_v55 = vpop.f32.mrf.mxu0 }
  0xef   :  { %v218_v56 = vadd.f32 %v1235_v53, %v1178_v42  ;;  %315 = vrot.lane.b32.xlu0 %v257_v54, %s1458_s0  ;;  %v249_v26 = vpack.c.bf16 %v241_v24, %v241_v24 }
  0xf0   :  { %v1237_v57 = vpop.f32.mrf.mxu0 }
  0xf1   :  { %v1238_v58 = vadd.f32 %v1237_v57, %v1236_v55  ;;  %v258_v59 = vpack.c.bf16 %v218_v56, %v218_v56  ;;  %v242_v29 = vmul.f32 0.0625, %v218_v56  ;;  %v657_v55 = vlaneseq }
  0xf2   :  { %v1239_v60 = vpop.f32.mrf.mxu0 }
  0xf3   :  { %v221_v61 = vadd.f32 %v1238_v58, %v1178_v42  ;;  %364 = vrot.lane.b32.xlu1 %v258_v59, %s1458_s0  ;;  %v250_v32 = vpack.c.bf16 %v242_v29, %v242_v29  ;;  %v658_v56 = vshrl.u32 %v657_v55, 7  ;;  %v660_v57 = vand.u32 127, %v657_v55 }
  0xf4   :  { %v1240_v62 = vpop.f32.mrf.mxu0 }
  0xf5   :  { %v1241_v63 = vadd.f32 %v1240_v62, %v1239_v60  ;;  %v259_v0 = vpack.c.bf16 %v221_v61, %v221_v61  ;;  %v243_v34 = vmul.f32 0.0625, %v221_v61  ;;  %vm1671_vm3 = vcmp.gt.s32.totalorder %v660_v57, %v658_v56 }
  0xf6   :  { %v1242_v1 = vpop.f32.mrf.mxu0 }
  0xf7   :  { %v1591_v2 = vadd.f32 %v1241_v63, %v1178_v42  ;;  %413 = vrot.lane.b32.xlu1 %v259_v0, %s1458_s0  ;;  %v251_v38 = vpack.c.bf16 %v243_v34, %v243_v34 }
  0xf8   :  { %v1243_v3 = vpop.f32.mrf.mxu0 }
  0xf9   :  { %v1244_v4 = vadd.f32 %v1243_v3, %v1242_v1  ;;  %v1596_v5 = vpack.c.bf16 %v1591_v2, %v1591_v2  ;;  %v244_v43 = vmul.f32 0.0625, %v1591_v2 }
  0xfa   :  { %v1245_v6 = vpop.f32.mrf.mxu0 }
  0xfb   :  { %v1598_v7 = vadd.f32 %v1244_v4, %v1178_v42  ;;  %462 = vrot.lane.b32.xlu0 %v1596_v5, %s1458_s0  ;;  %v252_v46 = vpack.c.bf16 %v244_v43, %v244_v43 }
  0xfc   :  { %v1246_v8 = vpop.f32.mrf.mxu0 }
  0xfd   :  { %v1247_v9 = vadd.f32 %v1246_v8, %v1245_v6  ;;  %v1604_v10 = vpack.c.bf16 %v1598_v7, %v1598_v7  ;;  %v245_v48 = vmul.f32 0.0625, %v1598_v7 }
  0xfe   :  { %v1248_v11 = vpop.f32.mrf.mxu0 }
  0xff   :  { %v1606_v12 = vadd.f32 %v1247_v9, %v1178_v42  ;;  %511 = vrot.lane.b32.xlu1 %v1604_v10, %s1458_s0 }
 0x100   :  { %v1249_v13 = vpop.f32.mrf.mxu0 }
 0x101   :  { %v1250_v14 = vadd.f32 %v1249_v13, %v1248_v11  ;;  %v1612_v15 = vpack.c.bf16 %v1606_v12, %v1606_v12  ;;  %v246_v51 = vmul.f32 0.0625, %v1606_v12 }
 0x103   :  { %v237_v16 = vadd.f32 %v1250_v14, %v1178_v42  ;;  %560 = vrot.lane.b32.xlu0 %v1612_v15, %s1458_s0  ;;  %v254_v53 = vpack.c.bf16 %v246_v51, %v246_v51 }
 0x105   :  { %v1616_v17 = vpack.c.bf16 %v237_v16, %v237_v16  ;;  %v247_v39 = vmul.f32 0.0625, %v237_v16 }
 0x107   :  { %609 = vrot.lane.b32.xlu1 %v1616_v17, %s1458_s0  ;;  %802 = vrot.lane.b32.xlu0 %v257_v54, %s1459_s2  ;;  %v255_v44 = vpack.c.bf16 %v247_v39, %v247_v39 }
 0x10b   :  { %753 = vrot.lane.b32.xlu1 %v256_v49, %s1459_s2  ;;  %v253_v49 = vpack.c.bf16 %v245_v48, %v245_v48 }
 0x10f   :  { %850 = vrot.lane.b32.xlu1 %v258_v59, %s1459_s2 }
 0x113   :  { %898 = vrot.lane.b32.xlu1 %v259_v0, %s1459_s2 }
 0x15d   :  { %v266_v18 = vpop.permute.xlu0 %265 }
 0x15e   :  { %v272_v19 = vsel %vm267_vm1, %v266_v18, 0 }
 0x15f   :  { %1284 = vmatpush3.bf16.xpose.msra.mxu1 %v272_v19 }
 0x160   :  { %1289 = vmatprep.subr.bf16.mxu1 %v1456_v40 }
 0x161   :  { %v316_v21 = vpop.permute.xlu0 %315 }
 0x162   :  { %v321_v23 = vsel %vm267_vm1, %v316_v21, 0 }
 0x165   :  { %v365_v25 = vpop.permute.xlu1 %364 }
 0x166   :  { %1286 = vmatmul.mubr.msk.bf16.vlgmr.msra.gmra.mxu1 %vm267_vm1, %v248_v22  ;;  %v370_v27 = vsel %vm267_vm1, %v365_v25, 0 }
 0x167   :  { %1290 = vmatpush3.bf16.xpose.msra.mxu1 %v321_v23  ;;  %1291 = vmatprep.mubr.msk.bf16.mxu1 %vm1457_vm0, %v1456_v40 }
 0x168   :  { %1295 = vmatprep.subr.bf16.mxu1 %v1456_v40 }
 0x169   :  { %v414_v28 = vpop.permute.xlu1 %413 }
 0x16a   :  { %v419_v33 = vsel %vm267_vm1, %v414_v28, 0 }
 0x16d   :  { %v463_v30 = vpop.permute.xlu0 %462 }
 0x16e   :  { %1292 = vmatmul.mubr.msk.bf16.vlgmr.msra.gmra.mxu1 %vm267_vm1, %v249_v26  ;;  %v468_v41 = vsel %vm267_vm1, %v463_v30, 0 }
 0x16f   :  { %1296 = vmatpush3.bf16.xpose.msra.mxu1 %v370_v27  ;;  %1297 = vmatprep.mubr.msk.bf16.mxu1 %vm1457_vm0, %v1456_v40 }
 0x170   :  { %1301 = vmatprep.subr.bf16.mxu1 %v1456_v40 }
 0x171   :  { %v512_v31 = vpop.permute.xlu1 %511 }
 0x172   :  { %v517_v47 = vsel %vm267_vm1, %v512_v31, 0 }
 0x175   :  { %v561_v35 = vpop.permute.xlu0 %560 }
 0x176   :  { %1298 = vmatmul.mubr.msk.bf16.vlgmr.msra.gmra.mxu1 %vm267_vm1, %v250_v32  ;;  %v566_v50 = vsel %vm267_vm1, %v561_v35, 0 }
 0x177   :  { %1302 = vmatpush3.bf16.xpose.msra.mxu1 %v419_v33  ;;  %1303 = vmatprep.mubr.msk.bf16.mxu1 %vm1457_vm0, %v1456_v40 }
 0x178   :  { %1307 = vmatprep.subr.bf16.mxu1 %v1456_v40 }
 0x179   :  { %v610_v36 = vpop.permute.xlu1 %609  ;;  %v803_v42 = vpop.permute.xlu0 %802 }
 0x17a   :  { %v615_v37 = vsel %vm267_vm1, %v610_v36, 0  ;;  %v808_v45 = vsel %vm758_vm2, %v803_v42, 0 }
 0x17b   :  { %1326 = vmatpush3.bf16.xpose.msra.mxu0 %v615_v37 }
 0x17c   :  { %1337 = vmatprep.subr.bf16.mxu0 %v1456_v40 }
 0x17d   :  { %v754_v52 = vpop.permute.xlu1 %753 }
 0x17e   :  { %1304 = vmatmul.mubr.msk.bf16.vlgmr.msra.gmra.mxu1 %vm267_vm1, %v251_v38  ;;  %v760_v54 = vsel %vm758_vm2, %v754_v52, 0 }
 0x17f   :  { %1308 = vmatpush3.bf16.xpose.msra.mxu1 %v468_v41  ;;  %1309 = vmatprep.mubr.msk.bf16.mxu1 %vm1457_vm0, %v1456_v40 }
 0x180   :  { %1313 = vmatprep.subr.bf16.mxu1 %v1456_v40 }
 0x182   :  { %1328 = vmatmul.mubr.msk.bf16.vlgmr.msra.gmra.mxu0 %vm267_vm1, %v255_v44 }
 0x183   :  { %1338 = vmatpush3.bf16.msra.mxu0 %v808_v45  ;;  %1339 = vmatprep.mubr.msk.bf16.mxu0 %vm1457_vm0, %v1456_v40 }
 0x184   :  { %1349 = vmatprep.subr.bf16.mxu0 %v1456_v40 }
 0x186   :  { %1310 = vmatmul.mubr.msk.bf16.vlgmr.msra.gmra.mxu1 %vm267_vm1, %v252_v46 }
 0x187   :  { %1314 = vmatpush3.bf16.xpose.msra.mxu1 %v517_v47  ;;  %1315 = vmatprep.mubr.msk.bf16.mxu1 %vm1457_vm0, %v1456_v40 }
 0x188   :  { %1319 = vmatprep.subr.bf16.mxu1 %v1456_v40 }
 0x18e   :  { %1316 = vmatmul.mubr.msk.bf16.vlgmr.msra.gmra.mxu1 %vm267_vm1, %v253_v49 }
 0x18f   :  { %1320 = vmatpush3.bf16.xpose.msra.mxu1 %v566_v50  ;;  %1321 = vmatprep.mubr.msk.bf16.mxu1 %vm1457_vm0, %v1456_v40 }
 0x190   :  { %1331 = vmatprep.subr.bf16.mxu1 %v1456_v40 }
 0x196   :  { %1322 = vmatmul.mubr.msk.bf16.vlgmr.msra.gmra.mxu1 %vm267_vm1, %v254_v53 }
 0x197   :  { %1332 = vmatpush3.bf16.msra.mxu1 %v760_v54  ;;  %1333 = vmatprep.mubr.msk.bf16.mxu1 %vm1457_vm0, %v1456_v40 }
 0x198   :  { %1343 = vmatprep.subr.bf16.mxu1 %v1456_v40 }
 0x226   :  { %v308_v59 = vpop.f32.mrf.mxu1 }
 0x227   :  { %v664_v60 = vsel %vm1671_vm3, -1e+30, %v308_v59 }
 0x228   :  { %v1287_v61 = vpop.f32.mrf.mxu1  ;;  %v673_v62 = vsel %vm672_vm4, %v664_v60, -inf }
 0x229   :  { %674 = vmax.xlane.f32.xlu0 %v673_v62 }
 0x22a   :  { %v311_v63 = vpop.f32.mrf.mxu1 }
 0x22c   :  { %v1288_v0 = vpop.f32.mrf.mxu1 }
 0x22e   :  { %v357_v1 = vpop.f32.mrf.mxu1 }
 0x22f   :  { %v665_v2 = vsel %vm1671_vm3, -1e+30, %v357_v1 }
 0x230   :  { %v1293_v3 = vpop.f32.mrf.mxu1  ;;  %v676_v4 = vsel %vm672_vm4, %v665_v2, -inf }
 0x231   :  { %677 = vmax.xlane.f32.xlu1 %v676_v4 }
 0x232   :  { %v360_v6 = vpop.f32.mrf.mxu1 }
 0x234   :  { %v1294_v7 = vpop.f32.mrf.mxu1 }
 0x236   :  { %v406_v8 = vpop.f32.mrf.mxu1 }
 0x237   :  { %v666_v9 = vsel %vm1671_vm3, -1e+30, %v406_v8 }
 0x238   :  { %v1299_v11 = vpop.f32.mrf.mxu1  ;;  %v679_v12 = vsel %vm672_vm4, %v666_v9, -inf }
 0x239   :  { %680 = vmax.xlane.f32.xlu0 %v679_v12 }
 0x23a   :  { %v409_v13 = vpop.f32.mrf.mxu1 }
 0x23c   :  { %v1300_v14 = vpop.f32.mrf.mxu1 }
 0x23e   :  { %v455_v16 = vpop.f32.mrf.mxu1 }
 0x23f   :  { %v1686_v18 = vsel %vm1671_vm3, -1e+30, %v455_v16 }
 0x240   :  { %v1305_v19 = vpop.f32.mrf.mxu1  ;;  %v682_v20 = vsel %vm672_vm4, %v1686_v18, -inf }
 0x241   :  { %683 = vmax.xlane.f32.xlu0 %v682_v20 }
 0x242   :  { %v458_v21 = vpop.f32.mrf.mxu1  ;;  %v651_v22 = vpop.f32.mrf.mxu0 }
 0x243   :  { %v1692_v23 = vsel %vm1671_vm3, -1e+30, %v651_v22 }
 0x244   :  { %v1306_v24 = vpop.f32.mrf.mxu1  ;;  %v1329_v25 = vpop.f32.mrf.mxu0  ;;  %v694_v26 = vsel %vm672_vm4, %v1692_v23, -inf }
 0x245   :  { %695 = vmax.xlane.f32.xlu0 %v694_v26 }
 0x246   :  { %v504_v27 = vpop.f32.mrf.mxu1  ;;  %v654_v28 = vpop.f32.mrf.mxu0 }
 0x247   :  { %v1698_v29 = vsel %vm1671_vm3, -1e+30, %v504_v27 }
 0x248   :  { %v1311_v30 = vpop.f32.mrf.mxu1  ;;  %v1330_v31 = vpop.f32.mrf.mxu0  ;;  %v685_v32 = vsel %vm672_vm4, %v1698_v29, -inf }
 0x249   :  { %686 = vmax.xlane.f32.xlu1 %v685_v32 }
 0x24a   :  { %v507_v33 = vpop.f32.mrf.mxu1 }
 0x24c   :  { %v1312_v34 = vpop.f32.mrf.mxu1 }
 0x24e   :  { %v553_v35 = vpop.f32.mrf.mxu1 }
 0x24f   :  { %v1704_v36 = vsel %vm1671_vm3, -1e+30, %v553_v35 }
 0x250   :  { %v1317_v37 = vpop.f32.mrf.mxu1  ;;  %v688_v38 = vsel %vm672_vm4, %v1704_v36, -inf }
 0x251   :  { %689 = vmax.xlane.f32.xlu0 %v688_v38 }
 0x252   :  { %v556_v39 = vpop.f32.mrf.mxu1 }
 0x254   :  { %v1318_v41 = vpop.f32.mrf.mxu1 }
 0x256   :  { %v602_v42 = vpop.f32.mrf.mxu1 }
 0x257   :  { %v1716_v46 = vsel %vm1671_vm3, -1e+30, %v602_v42 }
 0x258   :  { %v1323_v43 = vpop.f32.mrf.mxu1  ;;  %v691_v47 = vsel %vm672_vm4, %v1716_v46, -inf }
 0x25a   :  { %994 = vrot.lane.b32.xlu1 %v1604_v10, %s1459_s2  ;;  %v605_v44 = vpop.f32.mrf.mxu1  ;;  %v851_v10 = vpop.permute.xlu1 %850 }
 0x25c   :  { %v1324_v45 = vpop.f32.mrf.mxu1 }
 0x25e   :  { %v899_v51 = vpop.permute.xlu1 %898 }
 0x25f   :  { %v904_v1 = vsel %vm758_vm2, %v899_v51, 0 }
 0x267   :  { %946 = vrot.lane.b32.xlu0 %v1596_v5, %s1459_s2 }
 0x26b   :  { %1042 = vrot.lane.b32.xlu0 %v1612_v15, %s1459_s2 }
 0x27e   :  { %692 = vmax.xlane.f32.xlu1 %v691_v47 }
 0x28f   :  { %1090 = vrot.lane.b32.xlu1 %v1616_v17, %s1459_s2  ;;  %v856_v17 = vsel %vm758_vm2, %v851_v10, 0 }
 0x2b2   :  { %v675_v48 = vpop.xlane.xlu0 %674 }
 0x2b3   :  { %v697_v49 = vsub.f32 %v664_v60, %v675_v48 }
 0x2b5   :  { %v705_v50 = vmul.f32 1.442695, %v697_v49 }
 0x2b7   :  { %1402 = vpow2.f32 %v705_v50 }
 0x2ba   :  { %v678_v5 = vpop.xlane.xlu1 %677 }
 0x2bb   :  { %v698_v52 = vsub.f32 %v665_v2, %v678_v5 }
 0x2bd   :  { %v707_v15 = vmul.f32 1.442695, %v698_v52 }
 0x2bf   :  { %1404 = vpow2.f32 %v707_v15 }
 0x2c2   :  { %v681_v53 = vpop.xlane.xlu0 %680 }
 0x2c3   :  { %v699_v54 = vsub.f32 %v666_v9, %v681_v53 }
 0x2c4   :  { %v1403_v55 = vpop.eup %1402 }
 0x2c5   :  { %v709_v56 = vmul.f32 1.442695, %v699_v54  ;;  %v721_v57 = vsel %vm672_vm4, %v1403_v55, 0.0  ;;  %v745_v58 = vpack.c.bf16 %v1403_v55, %v1403_v55 }
 0x2c6   :  { %722 = vadd.xlane.f32.xlu0 %v721_v57 }
 0x2c7   :  { %1406 = vpow2.f32 %v709_v56  ;;  %1334 = vmatmul.mubr.msk.bf16.vlgmr.msra.gmra.mxu1 %vm672_vm4, %v745_v58 }
 0x2c8   :  { %1344 = vmatpush3.bf16.msra.mxu1 %v856_v17  ;;  %1345 = vmatprep.mubr.msk.bf16.mxu1 %vm1457_vm0, %v1456_v40 }
 0x2c9   :  { %1355 = vmatprep.subr.bf16.mxu1 %v1456_v40 }
 0x2ca   :  { %v684_v59 = vpop.xlane.xlu0 %683 }
 0x2cb   :  { %v700_v60 = vsub.f32 %v1686_v18, %v684_v59 }
 0x2cc   :  { %v1405_v61 = vpop.eup %1404 }
 0x2cd   :  { %v711_v62 = vmul.f32 1.442695, %v700_v60  ;;  %v724_v63 = vsel %vm672_vm4, %v1405_v61, 0.0  ;;  %v746_v0 = vpack.c.bf16 %v1405_v61, %v1405_v61 }
 0x2ce   :  { %725 = vadd.xlane.f32.xlu1 %v724_v63  ;;  %v696_v9 = vpop.xlane.xlu0 %695 }
 0x2cf   :  { %1408 = vpow2.f32 %v711_v62  ;;  %1340 = vmatmul.mubr.msk.bf16.vlgmr.msra.gmra.mxu0 %vm672_vm4, %v746_v0  ;;  %v704_v11 = vsub.f32 %v1692_v23, %v696_v9 }
 0x2d0   :  { %1350 = vmatpush3.bf16.msra.mxu0 %v904_v1  ;;  %1351 = vmatprep.mubr.msk.bf16.mxu0 %vm1457_vm0, %v1456_v40 }
 0x2d1   :  { %1361 = vmatprep.subr.bf16.mxu0 %v1456_v40  ;;  %v719_v18 = vmul.f32 1.442695, %v704_v11 }
 0x2d2   :  { %v687_v2 = vpop.xlane.xlu1 %686 }
 0x2d3   :  { %v701_v3 = vsub.f32 %v1698_v29, %v687_v2 }
 0x2d4   :  { %v1407_v4 = vpop.eup %1406 }
 0x2d5   :  { %v713_v6 = vmul.f32 1.442695, %v701_v3  ;;  %v727_v7 = vsel %vm672_vm4, %v1407_v4, 0.0  ;;  %v747_v8 = vpack.c.bf16 %v1407_v4, %v1407_v4 }
 0x2d6   :  { %728 = vadd.xlane.f32.xlu0 %v727_v7  ;;  %v995_v16 = vpop.permute.xlu1 %994 }
 0x2d7   :  { %1410 = vpow2.f32 %v713_v6  ;;  %1346 = vmatmul.mubr.msk.bf16.vlgmr.msra.gmra.mxu1 %vm672_vm4, %v747_v8  ;;  %v1000_v24 = vsel %vm758_vm2, %v995_v16, 0 }
 0x2d8   :  { %1357 = vmatprep.mubr.msk.bf16.mxu1 %vm1457_vm0, %v1456_v40 }
 0x2da   :  { %v690_v12 = vpop.xlane.xlu0 %689 }
 0x2db   :  { %v702_v13 = vsub.f32 %v1704_v36, %v690_v12 }
 0x2dc   :  { %v1409_v14 = vpop.eup %1408 }
 0x2dd   :  { %v715_v19 = vmul.f32 1.442695, %v702_v13  ;;  %v730_v20 = vsel %vm672_vm4, %v1409_v14, 0.0  ;;  %v748_v21 = vpack.c.bf16 %v1409_v14, %v1409_v14 }
 0x2de   :  { %731 = vadd.xlane.f32.xlu0 %v730_v20  ;;  %v947_v22 = vpop.permute.xlu0 %946 }
 0x2df   :  { %1412 = vpow2.f32 %v715_v19  ;;  %v952_v25 = vsel %vm758_vm2, %v947_v22, 0  ;;  %1352 = vmatmul.mubr.msk.bf16.vlgmr.msra.gmra.mxu0 %vm672_vm4, %v748_v21 }
 0x2e0   :  { %1362 = vmatpush3.bf16.msra.mxu0 %v1000_v24  ;;  %1356 = vmatpush3.bf16.msra.mxu1 %v952_v25  ;;  %1414 = vpow2.f32 %v719_v18 }
 0x2e1   :  { %1367 = vmatprep.subr.bf16.mxu1 %v1456_v40  ;;  %1363 = vmatprep.mubr.msk.bf16.mxu0 %vm1457_vm0, %v1456_v40 }
 0x2e2   :  { %1373 = vmatprep.subr.bf16.mxu0 %v1456_v40  ;;  %v1043_v26 = vpop.permute.xlu0 %1042 }
 0x2e3   :  { %v1048_v29 = vsel %vm758_vm2, %v1043_v26, 0 }
 0x2e4   :  { %v1411_v23 = vpop.eup %1410 }
 0x2e5   :  { %v733_v27 = vsel %vm672_vm4, %v1411_v23, 0.0  ;;  %v749_v28 = vpack.c.bf16 %v1411_v23, %v1411_v23 }
 0x2e6   :  { %734 = vadd.xlane.f32.xlu1 %v733_v27 }
 0x2e7   :  { %1358 = vmatmul.mubr.msk.bf16.vlgmr.msra.gmra.mxu1 %vm672_vm4, %v749_v28 }
 0x2e8   :  { %1368 = vmatpush3.bf16.msra.mxu1 %v1048_v29  ;;  %1369 = vmatprep.mubr.msk.bf16.mxu1 %vm1457_vm0, %v1456_v40 }
 0x2ec   :  { %v1413_v30 = vpop.eup %1412 }
 0x2ed   :  { %v736_v31 = vsel %vm672_vm4, %v1413_v30, 0.0  ;;  %v750_v32 = vpack.c.bf16 %v1413_v30, %v1413_v30  ;;  %v1415_v33 = vpop.eup %1414 }
 0x2ee   :  { %737 = vadd.xlane.f32.xlu0 %v736_v31  ;;  %v742_v34 = vsel %vm672_vm4, %v1415_v33, 0.0  ;;  %v752_v41 = vpack.c.bf16 %v1415_v33, %v1415_v33 }
 0x2ef   :  { %1364 = vmatmul.mubr.msk.bf16.vlgmr.msra.gmra.mxu0 %vm672_vm4, %v750_v32 }
 0x2f0   :  { %1375 = vmatprep.mubr.msk.bf16.mxu0 %vm1457_vm0, %v1456_v40 }
 0x2f2   :  { %743 = vadd.xlane.f32.xlu0 %v742_v34 }
 0x307   :  { %v693_v35 = vpop.xlane.xlu1 %692 }
 0x308   :  { %v703_v36 = vsub.f32 %v1716_v46, %v693_v35 }
 0x30a   :  { %v717_v37 = vmul.f32 1.442695, %v703_v36 }
 0x30b   :  { %v1091_v38 = vpop.permute.xlu1 %1090 }
 0x30c   :  { %1416 = vpow2.f32 %v717_v37  ;;  %v1096_v39 = vsel %vm758_vm2, %v1091_v38, 0 }
 0x30d   :  { %1374 = vmatpush3.bf16.msra.mxu0 %v1096_v39 }
 0x310   :  { %1376 = vmatmul.mubr.msk.bf16.vlgmr.msra.gmra.mxu0 %vm672_vm4, %v752_v41 }
 0x319   :  { %v1417_v42 = vpop.eup %1416 }
 0x31a   :  { %v739_v43 = vsel %vm672_vm4, %v1417_v42, 0.0  ;;  %v751_v44 = vpack.c.bf16 %v1417_v42, %v1417_v42 }
 0x31b   :  { %740 = vadd.xlane.f32.xlu1 %v739_v43 }
 0x31c   :  { %1370 = vmatmul.mubr.msk.bf16.vlgmr.msra.gmra.mxu1 %vm672_vm4, %v751_v44 }
 0x34f   :  { %v723_v40 = vpop.xlane.xlu0 %722 }
 0x350   :  { %1418 = vrcp.f32 %v723_v40 }
 0x357   :  { %v726_v45 = vpop.xlane.xlu1 %725 }
 0x358   :  { %1420 = vrcp.f32 %v726_v45 }
 0x35d   :  { %v1419_v46 = vpop.eup %1418 }
 0x35f   :  { %v729_v47 = vpop.xlane.xlu0 %728 }
 0x360   :  { %1422 = vrcp.f32 %v729_v47 }
 0x365   :  { %v1421_v5 = vpop.eup %1420 }
 0x367   :  { %v732_v52 = vpop.xlane.xlu0 %731 }
 0x368   :  { %1424 = vrcp.f32 %v732_v52 }
 0x36d   :  { %v1423_v57 = vpop.eup %1422 }
 0x36f   :  { %v735_v58 = vpop.xlane.xlu1 %734 }
 0x370   :  { %1426 = vrcp.f32 %v735_v58 }
 0x375   :  { %v1425_v63 = vpop.eup %1424 }
 0x377   :  { %v738_v0 = vpop.xlane.xlu0 %737 }
 0x378   :  { %1428 = vrcp.f32 %v738_v0 }
 0x37b   :  { %v744_v22 = vpop.xlane.xlu0 %743 }
 0x37c   :  { %1430 = vrcp.f32 %v744_v22 }
 0x37d   :  { %v1427_v7 = vpop.eup %1426 }
 0x385   :  { %v1429_v14 = vpop.eup %1428 }
 0x387   :  { %v796_v10 = vpop.f32.mrf.mxu1 }
 0x388   :  { %v1146_v48 = vmul.f32 %v1419_v46, %v796_v10 }
 0x389   :  { %v1335_v49 = vpop.f32.mrf.mxu1  ;;  %v1431_v25 = vpop.eup %1430 }
 0x38a   :  { %1154 = vst.msk [vmem:[#allocation2] sm:$0xff] %vm267_vm1, %v1146_v48 }
 0x38b   :  { %v799_v50 = vpop.f32.mrf.mxu1 }
 0x38d   :  { %v1336_v51 = vpop.f32.mrf.mxu1 }
 0x38f   :  { %v844_v15 = vpop.f32.mrf.mxu0 }
 0x390   :  { %v1147_v53 = vmul.f32 %v1421_v5, %v844_v15 }
 0x391   :  { %v1341_v54 = vpop.f32.mrf.mxu0 }
 0x392   :  { %1155 = vst.msk [vmem:[#allocation2 + $0x8] sm:$0xff] %vm267_vm1, %v1147_v53 }
 0x393   :  { %v847_v55 = vpop.f32.mrf.mxu0 }
 0x395   :  { %v1342_v56 = vpop.f32.mrf.mxu0 }
 0x397   :  { %v892_v17 = vpop.f32.mrf.mxu1 }
 0x398   :  { %v1148_v59 = vmul.f32 %v1423_v57, %v892_v17 }
 0x399   :  { %v1347_v60 = vpop.f32.mrf.mxu1 }
 0x39a   :  { %1156 = vst.msk [vmem:[#allocation2 + $0x10] sm:$0xff] %vm267_vm1, %v1148_v59 }
 0x39b   :  { %v895_v61 = vpop.f32.mrf.mxu1 }
 0x39d   :  { %v1348_v62 = vpop.f32.mrf.mxu1 }
 0x39f   :  { %v940_v1 = vpop.f32.mrf.mxu0 }
 0x3a0   :  { %v1149_v2 = vmul.f32 %v1425_v63, %v940_v1 }
 0x3a1   :  { %v1353_v3 = vpop.f32.mrf.mxu0 }
 0x3a2   :  { %1157 = vst.msk [vmem:[#allocation2 + $0x18] sm:$0xff] %vm267_vm1, %v1149_v2 }
 0x3a3   :  { %v943_v4 = vpop.f32.mrf.mxu0 }
 0x3a4   :  { %v741_v24 = vpop.xlane.xlu1 %740 }
 0x3a5   :  { %v1354_v6 = vpop.f32.mrf.mxu0  ;;  %1432 = vrcp.f32 %v741_v24 }
 0x3a7   :  { %v988_v8 = vpop.f32.mrf.mxu1 }
 0x3a8   :  { %v1150_v9 = vmul.f32 %v1427_v7, %v988_v8 }
 0x3a9   :  { %v1359_v11 = vpop.f32.mrf.mxu1 }
 0x3aa   :  { %1158 = vst.msk [vmem:[#allocation2 + $0x20] sm:$0xff] %vm267_vm1, %v1150_v9 }
 0x3ab   :  { %v991_v12 = vpop.f32.mrf.mxu1 }
 0x3ad   :  { %v1360_v13 = vpop.f32.mrf.mxu1 }
 0x3af   :  { %v1036_v16 = vpop.f32.mrf.mxu0 }
 0x3b0   :  { %v1151_v18 = vmul.f32 %v1429_v14, %v1036_v16 }
 0x3b1   :  { %v1365_v19 = vpop.f32.mrf.mxu0 }
 0x3b2   :  { %1159 = vst.msk [vmem:[#allocation2 + $0x28] sm:$0xff] %vm267_vm1, %v1151_v18  ;;  %v1433_v30 = vpop.eup %1432 }
 0x3b3   :  { %v1039_v20 = vpop.f32.mrf.mxu0 }
 0x3b5   :  { %v1366_v21 = vpop.f32.mrf.mxu0 }
 0x3d0   :  { %v1132_v23 = vpop.f32.mrf.mxu0 }
 0x3d1   :  { %v1153_v26 = vmul.f32 %v1431_v25, %v1132_v23 }
 0x3d2   :  { %v1377_v27 = vpop.f32.mrf.mxu0 }
 0x3d3   :  { %1161 = vst.msk [vmem:[#allocation2 + $0x38] sm:$0xff] %vm267_vm1, %v1153_v26 }
 0x3d4   :  { %v1135_v28 = vpop.f32.mrf.mxu0 }
 0x3d6   :  { %v1378_v29 = vpop.f32.mrf.mxu0 }
 0x3dc   :  { %v1084_v31 = vpop.f32.mrf.mxu1 }
 0x3dd   :  { %v1152_v32 = vmul.f32 %v1433_v30, %v1084_v31 }
 0x3de   :  { %v1371_v33 = vpop.f32.mrf.mxu1 }
 0x3df   :  { %1160 = vst.msk [vmem:[#allocation2 + $0x30] sm:$0xff] %vm267_vm1, %v1152_v32 }
 0x3e0   :  { %v1087_v34 = vpop.f32.mrf.mxu1 }
 0x3e1   :  { %1445 = shalt.err (!%p1442_p4)
}
 0x3e2   :  { %s1461_s26 = smov 128   ;;  %s1462_s27 = smov 8   ;;  %v1372_v35 = vpop.f32.mrf.mxu1 }
 0x3e3   :  { %1173 = dma.vmem_to_hbm [thread:$0]  %s1168_s24, 1024, %s1779_s3, [#allocation3], %s1461_s26, %s1461_s26, %s1462_s27  }
 0x3e4   :  { %1454 = dma.done.wait [#allocation3], 1024  }
 0x3e5   :  { %1455 = vsyncadd [#allocation3], 4294966272 }
 0x3e6   :  { %1177 = vsyncpa [#allocation3], 1 }

</bundles_post_ra>
